<compile_context>
chip_gen: v7x
topology: tpu7x:2x2x1
jax: 0.10.0
libtpu: 0.0.40
codegen_flags: <defaults>
</compile_context>

<pallas_src>
import functools

import jax
import jax.numpy as jnp
from jax import lax
from jax.experimental import pallas as pl
from jax.experimental.pallas import tpu as pltpu


_LANE = 128            # lane / MXU alignment for padded feature dims
# TODO(synk): make _LANE generation-aware (256 on v6e/v7x MXUs) when feature
# dims are large; 128 is natively aligned on v5e and always correct.
_MAX_BATCH_TILE = 512  # batch (lane) tile ceiling for the grid


def _round_up(n, m):
    return ((n + m - 1) // m) * m


def _vmem_budget():
    """~90% of per-core VMEM capacity (queried; conservative 64 MiB fallback)."""
    try:
        cap = int(pltpu.get_tpu_info().vmem_capacity_bytes)
    except Exception:
        cap = 64 << 20        # v7x per-core VMEM; safe lower bound everywhere
    return int(0.9 * cap)


# ----------------------------------------------------------------------------
# Kernels
# ----------------------------------------------------------------------------
def _make_resident_kernel(num_layers, compute_dtype):
    """Weights VMEM-resident.  refs = (x_ref, w_ref_0..w_ref_{L-1}, o_ref)."""

    def kernel(*refs):
        x_ref = refs[0]                       # [tb, in_p]  (input dtype)
        w_refs = refs[1:1 + num_layers]       # each [op_k, ip_k]  compute dtype
        o_ref = refs[1 + num_layers]          # [out_p, tb]

        x = x_ref[...].astype(compute_dtype)
        # Layer 0: contract the shared feature axis (trans_b form on the MXU);
        # no wrapper-side transpose of x.
        acc = lax.dot_general(w_refs[0][...], x, (((1,), (1,)), ((), ())),
                              preferred_element_type=jnp.float32)
        h = acc.astype(compute_dtype) if num_layers > 1 else acc
        for k in range(1, num_layers):
            # Dropout(p=0.0) between layers is the identity -> nothing to do.
            acc = jnp.dot(w_refs[k][...], h, preferred_element_type=jnp.float32)
            h = acc.astype(compute_dtype) if k + 1 < num_layers else acc
        o_ref[...] = h.astype(o_ref.dtype)

    return kernel


def _make_stream_kernel(num_layers, compute_dtype, in_p, out_p):
    """Weights streamed from HBM layer-by-layer with a 2-slot DMA buffer."""

    def kernel(x_ref, w_hbm, o_ref, wbuf, sem):
        # w_hbm: [L, D, D] in HBM;  wbuf: VMEM [2, D, D];  sem: DMA sems [2]
        def w_copy(layer, slot):
            return pltpu.make_async_copy(w_hbm.at[layer], wbuf.at[slot],
                                         sem.at[slot])

        w_copy(0, 0).start()                       # prime slot 0
        x = x_ref[...].astype(compute_dtype)       # [tb, in_p]
        h = None
        for k in range(num_layers):                # static unroll (L is small)
            slot = k % 2
            w_copy(k, slot).wait()
            if k + 1 < num_layers:                 # prefetch next layer's W
                w_copy(k + 1, 1 - slot).start()
            w = wbuf[slot]                         # [D, D]
            if k == 0:
                acc = lax.dot_general(w[:, :in_p], x, (((1,), (1,)), ((), ())),
                                      preferred_element_type=jnp.float32)
            else:
                acc = jnp.dot(w, h, preferred_element_type=jnp.float32)
            h = acc.astype(compute_dtype) if k + 1 < num_layers else acc
        o_ref[...] = h[:out_p, :].astype(o_ref.dtype)

    return kernel


# ----------------------------------------------------------------------------
# One-time weight preparation (outside the jitted forward)
# ----------------------------------------------------------------------------
def prepare_weights(weights_pt, *, compute_dtype=jnp.bfloat16, stream=None):
    """Pad + cast the PyTorch-layout weights ONCE; reuse across forward calls.

    Returns (prepared, stream_flag):
      stream=False -> tuple of padded [op_k, ip_k] arrays (VMEM-resident path).
      stream=True  -> single stacked [L, D, D] array (layer-streaming path).
    """
    padded_shapes = [(_round_up(w.shape[0], _LANE), _round_up(w.shape[1], _LANE))
                     for w in weights_pt]
    itemsize = jnp.dtype(compute_dtype).itemsize
    w_bytes = sum(op * ip for op, ip in padded_shapes) * itemsize
    if stream is None:
        # Stream whenever the (single-buffered) resident stack would eat most
        # of per-core VMEM (leaves room for x/out tiles + fp32 intermediates).
        stream = w_bytes + (16 << 20) > _vmem_budget()

    if not stream:
        weights = tuple(
            jnp.pad(w, ((0, op - w.shape[0]), (0, ip - w.shape[1]))
                    ).astype(compute_dtype)
            for w, (op, ip) in zip(weights_pt, padded_shapes))
        return weights, False

    max_dim = max(max(op, ip) for op, ip in padded_shapes)
    stacked = jnp.stack([
        jnp.pad(w, ((0, max_dim - w.shape[0]), (0, max_dim - w.shape[1]))
                ).astype(compute_dtype)
        for w in weights_pt])                     # [L, D, D]
    return stacked, True


# ----------------------------------------------------------------------------
# Forward
# ----------------------------------------------------------------------------
@functools.partial(
    jax.jit,
    static_argnames=("output_size", "stream", "compute_dtype", "out_dtype"))
def linear_net_forward(x, weights, *, output_size, stream=False,
                       compute_dtype=jnp.bfloat16, out_dtype=jnp.float32):
    """LinearNet forward.  Returns [output_size, batch] (== PyTorch out.t()).

    `weights` must come from `prepare_weights` (already padded / cast)."""
    batch, input_size = x.shape

    if stream:
        num_layers = int(weights.shape[0])
        max_dim = int(weights.shape[1])
        in_p = min(_round_up(input_size, _LANE), max_dim)
        out_p = min(_round_up(output_size, _LANE), max_dim)
        max_feat_p = max_dim
        w_itemsize = jnp.dtype(weights.dtype).itemsize
        w_vmem = 2 * max_dim * max_dim * w_itemsize        # 2-slot DMA buffer
        w_hbm_bytes = num_layers * max_dim * max_dim * w_itemsize
    else:
        num_layers = len(weights)
        in_p = weights[0].shape[1]
        out_p = weights[-1].shape[0]
        max_feat_p = max((in_p,) + tuple(w.shape[0] for w in weights))
        w_itemsize = jnp.dtype(weights[0].dtype).itemsize
        w_vmem = sum(w.size for w in weights) * w_itemsize  # Buffered(1): 1x
        w_hbm_bytes = w_vmem
    assert input_size <= in_p and output_size <= out_p

    x_itemsize = jnp.dtype(x.dtype).itemsize
    out_itemsize = jnp.dtype(out_dtype).itemsize
    budget = _vmem_budget()

    def working_set(tb_):
        return (w_vmem
                + 2 * tb_ * in_p * x_itemsize        # double-buffered x tiles
                + 2 * out_p * tb_ * out_itemsize     # double-buffered out tiles
                + 2 * max_feat_p * tb_ * 4           # fp32 intermediates
                + (2 << 20))                         # slack

    # ---- batch tile: big enough to amortize per-step overhead, >=2 steps on
    # ---- larger batches so ("parallel",) shards across v7x's 2 TensorCores.
    batch_p0 = _round_up(batch, _LANE)
    if batch_p0 <= _LANE:
        tb = _LANE
    else:
        tb = min(_MAX_BATCH_TILE, _round_up(pl.cdiv(batch_p0, 2), _LANE))
    while tb > _LANE and working_set(tb) > budget:
        tb = _round_up(tb // 2, _LANE)
    batch_p = _round_up(batch, tb)
    n_tiles = batch_p // tb
    vmem_limit = int(min(max(working_set(tb), 16 << 20), budget))

    # ---- pad x (fp32; cast to compute dtype happens in-kernel, no extra pass)
    if (batch_p, in_p) != (batch, input_size):
        x = jnp.pad(x, ((0, batch_p - batch), (0, in_p - input_size)))

    # ---- cost hint ----------------------------------------------------------
    if stream:
        layer_flops = num_layers * max_dim * max_dim
        w_read = w_hbm_bytes * n_tiles               # weights re-read per tile
    else:
        layer_flops = sum(w.shape[0] * w.shape[1] for w in weights)
        w_read = w_hbm_bytes
    cost = pl.CostEstimate(
        flops=2 * batch_p * layer_flops, transcendentals=0,
        bytes_accessed=int(batch_p * in_p * x_itemsize + w_read
                           + out_p * batch_p * out_itemsize))

    # ---- specs / pallas_call -------------------------------------------------
    if stream:
        kernel = _make_stream_kernel(num_layers, compute_dtype, in_p, out_p)
        in_specs = [pl.BlockSpec((tb, in_p), lambda i: (i, 0)),
                    pl.BlockSpec(memory_space=pl.ANY)]      # weights stay in HBM
        scratch_shapes = [pltpu.VMEM((2, max_dim, max_dim), weights.dtype),
                          pltpu.SemaphoreType.DMA((2,))]
        operands = (x, weights)
        # TODO(synk): if a single layer's [D, D] weight exceeds VMEM, K-tile the
        # per-layer matmul (emit_pipeline over the contraction dim) as well.
    else:
        kernel = _make_resident_kernel(num_layers, compute_dtype)
        in_specs = ([pl.BlockSpec((tb, in_p), lambda i: (i, 0))] +
                    [pl.BlockSpec(w.shape, lambda i: (0, 0),
                                  pipeline_mode=pl.Buffered(1))  # 1x VMEM, resident
                     for w in weights])
        scratch_shapes = []
        operands = (x,) + tuple(weights)

    out_padded = pl.pallas_call(
        kernel,
        out_shape=jax.ShapeDtypeStruct((out_p, batch_p), out_dtype),
        grid_spec=pltpu.PrefetchScalarGridSpec(
            num_scalar_prefetch=0,
            grid=(n_tiles,),
            in_specs=in_specs,
            out_specs=pl.BlockSpec((out_p, tb), lambda i: (0, i)),
            scratch_shapes=scratch_shapes,
        ),
        compiler_params=pltpu.CompilerParams(
            dimension_semantics=("parallel",),
            vmem_limit_bytes=vmem_limit,
        ),
        cost_estimate=cost,
    )(*operands)

    # Strip padding back to the true output shape [output_size, batch].
    return out_padded[:output_size, :batch]


# ----------------------------------------------------------------------------
# Deterministic weight init (same shapes / layout as the PyTorch module)
# ----------------------------------------------------------------------------
def make_linear_net_params(key, layers, hidden_width, input_size, output_size):
    layer_sizes = [input_size] + [hidden_width] * (layers - 1) + [output_size]
    weights = []
    for i in range(layers):
        key, sub = jax.random.split(key)
        bound = 1.0 / jnp.sqrt(layer_sizes[i])
        w = jax.random.uniform(
            sub, (layer_sizes[i + 1], layer_sizes[i]),
            minval=-bound, maxval=bound, dtype=jnp.float32)
        weights.append(w)
    return tuple(weights)


if __name__ == "__main__":
    num_layers = 3
    hidden_width = 32
    input_size = 16
    output_size = 8
    batch = 8

    key = jax.random.PRNGKey(0)
    key, kx = jax.random.split(key)
    x = jax.random.normal(kx, (batch, input_size), dtype=jnp.float32)
    weights_pt = make_linear_net_params(
        key, num_layers, hidden_width, input_size, output_size)

    # Reference of the PyTorch forward (bias=False, Dropout(p=0.0) = identity),
    # computed with the same bf16-operand / fp32-accumulation recipe.
    def ref_forward(xv, ws):
        acc = lax.dot_general(ws[0].astype(jnp.bfloat16), xv.astype(jnp.bfloat16),
                              (((1,), (1,)), ((), ())),
                              preferred_element_type=jnp.float32)
        h = acc.astype(jnp.bfloat16) if len(ws) > 1 else acc
        for k in range(1, len(ws)):
            acc = jnp.dot(ws[k].astype(jnp.bfloat16), h,
                          preferred_element_type=jnp.float32)
            h = acc.astype(jnp.bfloat16) if k + 1 < len(ws) else acc
        return h                                   # [output_size, batch] fp32

    ref = ref_forward(x, weights_pt)

    # Path 1: VMEM-resident weights (pre-padded/cast once, Buffered(1)).
    w_res, stream_res = prepare_weights(weights_pt, stream=False)
    out_res = jax.block_until_ready(
        linear_net_forward(x, w_res, output_size=output_size, stream=stream_res))
    assert out_res.shape == (output_size, batch), out_res.shape
    assert out_res.dtype == jnp.float32, out_res.dtype
    assert jnp.allclose(out_res, ref, atol=2e-2, rtol=2e-2), "resident mismatch"

    # Path 2: layer-streamed weights (manual double-buffered DMA over layers).
    w_stk, stream_stk = prepare_weights(weights_pt, stream=True)
    out_stk = jax.block_until_ready(
        linear_net_forward(x, w_stk, output_size=output_size, stream=stream_stk))
    assert out_stk.shape == (output_size, batch), out_stk.shape
    assert jnp.allclose(out_stk, ref, atol=2e-2, rtol=2e-2), "streaming mismatch"

    print("KERNEL_OK")
</pallas_src>

<mosaic_0001>
module attributes {stable_mosaic.version = 11 : i64} {
  func.func @kernel(%arg0: i32, %arg1: memref<128x128xf32, #tpu.memory_space<vmem>>, %arg2: memref<128x128xbf16, #tpu.memory_space<vmem>>, %arg3: memref<128x128xbf16, #tpu.memory_space<vmem>>, %arg4: memref<128x128xbf16, #tpu.memory_space<vmem>>, %arg5: memref<128x128xf32, #tpu.memory_space<vmem>>) attributes {dimension_semantics = [#tpu.dimension_semantics<parallel>], iteration_bounds = array<i64: 1>, scalar_prefetch = 0 : i64, scratch_operands = 0 : i64, tpu.core_type = #tpu.core_type<tc>, window_params = [{transform_indices = @transform_0, window_bounds = array<i64: 128, 128>}, {pipeline_mode = #tpu.pipeline_mode<synchronous>, transform_indices = @transform_1, window_bounds = array<i64: 128, 128>}, {pipeline_mode = #tpu.pipeline_mode<synchronous>, transform_indices = @transform_2, window_bounds = array<i64: 128, 128>}, {pipeline_mode = #tpu.pipeline_mode<synchronous>, transform_indices = @transform_3, window_bounds = array<i64: 128, 128>}, {transform_indices = @transform_4, window_bounds = array<i64: 128, 128>}]} {
    %c0 = arith.constant 0 : index
    %c0_0 = arith.constant 0 : index
    %0 = vector.load %arg1[%c0, %c0_0] : memref<128x128xf32, #tpu.memory_space<vmem>>, vector<128x128xf32>
    %1 = arith.truncf %0 : vector<128x128xf32> to vector<128x128xbf16>
    %c0_1 = arith.constant 0 : index
    %c0_2 = arith.constant 0 : index
    %2 = vector.load %arg2[%c0_1, %c0_2] : memref<128x128xbf16, #tpu.memory_space<vmem>>, vector<128x128xbf16>
    %cst = arith.constant dense<0.000000e+00> : vector<128x128xf32>
    %3 = tpu.matmul %2, %1, %cst {dimension_numbers = #tpu.dot_dimension_numbers<[1], [1], [0], [0], [0, 0, 1, 0], [], []>} : vector<128x128xbf16>, vector<128x128xbf16>, vector<128x128xf32> -> vector<128x128xf32>
    %4 = arith.truncf %3 : vector<128x128xf32> to vector<128x128xbf16>
    %c0_3 = arith.constant 0 : index
    %c0_4 = arith.constant 0 : index
    %5 = vector.load %arg3[%c0_3, %c0_4] : memref<128x128xbf16, #tpu.memory_space<vmem>>, vector<128x128xbf16>
    %cst_5 = arith.constant dense<0.000000e+00> : vector<128x128xf32>
    %6 = tpu.matmul %5, %4, %cst_5 {dimension_numbers = #tpu.dot_dimension_numbers<[1], [0], [0], [1], [0, 0, 1, 1], [], []>} : vector<128x128xbf16>, vector<128x128xbf16>, vector<128x128xf32> -> vector<128x128xf32>
    %7 = arith.truncf %6 : vector<128x128xf32> to vector<128x128xbf16>
    %c0_6 = arith.constant 0 : index
    %c0_7 = arith.constant 0 : index
    %8 = vector.load %arg4[%c0_6, %c0_7] : memref<128x128xbf16, #tpu.memory_space<vmem>>, vector<128x128xbf16>
    %cst_8 = arith.constant dense<0.000000e+00> : vector<128x128xf32>
    %9 = tpu.matmul %8, %7, %cst_8 {dimension_numbers = #tpu.dot_dimension_numbers<[1], [0], [0], [1], [0, 0, 1, 1], [], []>} : vector<128x128xbf16>, vector<128x128xbf16>, vector<128x128xf32> -> vector<128x128xf32>
    %c0_9 = arith.constant 0 : index
    %c0_10 = arith.constant 0 : index
    %10 = vector.load %arg5[%c0_9, %c0_10] : memref<128x128xf32, #tpu.memory_space<vmem>>, vector<128x128xf32>
    tpu.vector_store %arg5[%c0_9, %c0_10], %9 {strides = array<i32>} : memref<128x128xf32, #tpu.memory_space<vmem>>, vector<128x128xf32>,
    return
  }
  func.func @transform_0(%arg0: i32) -> (i32, i32) {
    %c0_i32 = arith.constant 0 : i32
    %c0_i32_0 = arith.constant 0 : i32
    return %arg0, %c0_i32 : i32, i32
  }
  func.func @transform_1(%arg0: i32) -> (i32, i32) {
    %c0_i32 = arith.constant 0 : i32
    %c0_i32_0 = arith.constant 0 : i32
    %c0_i32_1 = arith.constant 0 : i32
    return %c0_i32, %c0_i32_0 : i32, i32
  }
  func.func @transform_2(%arg0: i32) -> (i32, i32) {
    %c0_i32 = arith.constant 0 : i32
    %c0_i32_0 = arith.constant 0 : i32
    %c0_i32_1 = arith.constant 0 : i32
    return %c0_i32, %c0_i32_0 : i32, i32
  }
  func.func @transform_3(%arg0: i32) -> (i32, i32) {
    %c0_i32 = arith.constant 0 : i32
    %c0_i32_0 = arith.constant 0 : i32
    %c0_i32_1 = arith.constant 0 : i32
    return %c0_i32, %c0_i32_0 : i32, i32
  }
  func.func @transform_4(%arg0: i32) -> (i32, i32) {
    %c0_i32 = arith.constant 0 : i32
    %c0_i32_0 = arith.constant 0 : i32
    return %c0_i32, %arg0 : i32, i32
  }
}

</mosaic_0001>

<bundles_post_ra>
// kernel: linear_net_forward.1
= control target key start
LH: loop header
LB: loop body
LE: loop exit
PB: predicated region body
PF: predicated region fallthrough
CT: control target
= control target key end

     0   :  { %9 = vsyncpa [#allocation3], 0  ;;  %s795_s15 = smov [#allocation2]   ;;  %s979_s0 = inlined_call_operand.vmem [shape: f32[128,128], index: 0, kind: input, shape index: {}]   ;;  %s980_s1 = inlined_call_operand.vmem [shape: bf16[128,128], index: 1, kind: input, shape index: {}]   ;;  %s981_s2 = inlined_call_operand.vmem [shape: bf16[128,128], index: 2, kind: input, shape index: {}]   ;;  %s982_s3 = inlined_call_operand.hbm [shape: bf16[128,128], index: 3, kind: input, shape index: {}]   ;;  %s983_s4 = inlined_call_operand.vmem [shape: f32[128,128], index: 4, kind: output, shape index: {}]  }
   0x1   :  { %s21_s16 = sshll.u32 %s795_s15, 4  ;;  %s771_s19 = scalar_lea.hbm %s982_s3, 1024  ;;  %s22_s16 = int_to_ptr.vmem [resolvable:$true] %s21_s16 }
   0x2   :  { %p772_p0 = scmp.ne.s32.totalorder %s982_s3, %s771_s19  ;;  %p775_p1 = scmp.lt.u32.totalorder %s771_s19, %s982_s3 }
   0x4   :  { %p777_p2 = pnand %p775_p1, %p772_p0 }
   0x6   :  { %780 = shalt.err (!%p777_p2)
}
   0x7   :  { %s781_s24 = scalar_lea.vmem %s22_s16, 1024  ;;  %p786_p4 = scmp.lt.s32.totalorder %s22_s16, %s22_s16 }
   0x8   :  { %p782_p3 = scmp.ne.s32.totalorder %s22_s16, %s781_s24  ;;  %p787_p5 = scmp.lt.s32.totalorder %s781_s24, %s781_s24 }
   0xa   :  { %p788_p6 = por %p787_p5, %p786_p4 }
   0xc   :  { %p789_p7 = pnand %p788_p6, %p782_p3 }
   0xe   :  { %792 = shalt.err (!%p789_p7)
}
   0xf   :  { %s796_s25 = smov 64   ;;  %s797_s26 = smov 4  }
  0x10   :  { %27 = dma.hbm_to_vmem [thread:$0]  %s982_s3, 1024, %s22_s16, [#allocation3], %s796_s25, %s796_s25, %s797_s26  }
  0x11   :  { %793 = dma.done.wait [#allocation3], 1024  }
  0x12   :  { %794 = vsyncadd [#allocation3], 4294966272  ;;  %v32_v0 = vld [vmem:[%s979_s0] sm:$0xff]  ;;  %v33_v1 = vld [vmem:[%s979_s0 + $0x8] sm:$0xff] }
  0x13   :  { %v34_v2 = vld [vmem:[%s979_s0 + $0x10] sm:$0xff]  ;;  %v48_v3 = vpack.c.bf16 %v33_v1, %v32_v0  ;;  %v35_v4 = vld [vmem:[%s979_s0 + $0x18] sm:$0xff]  ;;  %v36_v6 = vld [vmem:[%s979_s0 + $0x20] sm:$0xff] }
  0x14   :  { %v49_v5 = vpack.c.bf16 %v35_v4, %v34_v2  ;;  %v37_v7 = vld [vmem:[%s979_s0 + $0x28] sm:$0xff]  ;;  %v747_v8 = vld [vmem:[%s980_s1] sm:$0xff]   ;;  %v38_v10 = vld [vmem:[%s979_s0 + $0x30] sm:$0xff] }
  0x15   :  { %648 = vmatprep.subr.bf16.mxu0 %v48_v3  ;;  %664 = vmatprep.mubr.bf16.mxu0 %v747_v8  ;;  %v50_v9 = vpack.c.bf16 %v37_v7, %v36_v6  ;;  %v39_v11 = vld [vmem:[%s979_s0 + $0x38] sm:$0xff]  ;;  %v40_v13 = vld [vmem:[%s979_s0 + $0x40] sm:$0xff]  ;;  %v41_v14 = vld [vmem:[%s979_s0 + $0x48] sm:$0xff] }
  0x16   :  { %649 = vmatpush3.bf16.xpose.msra.mxu0 %v48_v3  ;;  %v51_v12 = vpack.c.bf16 %v39_v11, %v38_v10  ;;  %v52_v15 = vpack.c.bf16 %v41_v14, %v40_v13  ;;  %v42_v16 = vld [vmem:[%s979_s0 + $0x50] sm:$0xff]  ;;  %v43_v17 = vld [vmem:[%s979_s0 + $0x58] sm:$0xff]  ;;  %v44_v19 = vld [vmem:[%s979_s0 + $0x60] sm:$0xff] }
  0x17   :  { %650 = vmatprep.subr.bf16.mxu0 %v49_v5  ;;  %v53_v18 = vpack.c.bf16 %v43_v17, %v42_v16  ;;  %v45_v20 = vld [vmem:[%s979_s0 + $0x68] sm:$0xff]  ;;  %v46_v22 = vld [vmem:[%s979_s0 + $0x70] sm:$0xff]  ;;  %v47_v23 = vld [vmem:[%s979_s0 + $0x78] sm:$0xff] }
  0x18   :  { %v54_v21 = vpack.c.bf16 %v45_v20, %v44_v19  ;;  %v55_v24 = vpack.c.bf16 %v47_v23, %v46_v22  ;;  %v748_v25 = vld [vmem:[%s980_s1 + $0x8] sm:$0xff]   ;;  %v749_v26 = vld [vmem:[%s980_s1 + $0x10] sm:$0xff]   ;;  %v750_v27 = vld [vmem:[%s980_s1 + $0x18] sm:$0xff]  }
  0x19   :  { %v751_v28 = vld [vmem:[%s980_s1 + $0x20] sm:$0xff]   ;;  %v752_v29 = vld [vmem:[%s980_s1 + $0x28] sm:$0xff]   ;;  %v753_v30 = vld [vmem:[%s980_s1 + $0x30] sm:$0xff]  }
  0x1a   :  { %v754_v31 = vld [vmem:[%s980_s1 + $0x38] sm:$0xff]   ;;  %v755_v32 = vld [vmem:[%s981_s2] sm:$0xff]   ;;  %v756_v57 = vld [vmem:[%s981_s2 + $0x8] sm:$0xff]  }
  0x1b   :  { %696 = vmatprep.mubr.bf16.mxu1 %v755_v32  ;;  %v757_v58 = vld [vmem:[%s981_s2 + $0x10] sm:$0xff]   ;;  %v758_v59 = vld [vmem:[%s981_s2 + $0x18] sm:$0xff]   ;;  %v759_v60 = vld [vmem:[%s981_s2 + $0x20] sm:$0xff]  }
  0x1c   :  { %v760_v61 = vld [vmem:[%s981_s2 + $0x28] sm:$0xff]   ;;  %v761_v62 = vld [vmem:[%s981_s2 + $0x30] sm:$0xff]   ;;  %v762_v63 = vld [vmem:[%s981_s2 + $0x38] sm:$0xff]  }
  0x1d   :  { %v763_v0 = vld [vmem:[#allocation2] sm:$0xff]  }
  0x1e   :  { %651 = vmatpush3.bf16.xpose.msra.mxu0 %v49_v5 }
  0x1f   :  { %652 = vmatprep.subr.bf16.mxu0 %v50_v9 }
  0x26   :  { %653 = vmatpush3.bf16.xpose.msra.mxu0 %v50_v9 }
  0x27   :  { %654 = vmatprep.subr.bf16.mxu0 %v51_v12 }
  0x2e   :  { %655 = vmatpush3.bf16.xpose.msra.mxu0 %v51_v12 }
  0x2f   :  { %656 = vmatprep.subr.bf16.mxu0 %v52_v15 }
  0x36   :  { %657 = vmatpush3.bf16.xpose.msra.mxu0 %v52_v15 }
  0x37   :  { %658 = vmatprep.subr.bf16.mxu0 %v53_v18 }
  0x3e   :  { %659 = vmatpush3.bf16.xpose.msra.mxu0 %v53_v18 }
  0x3f   :  { %660 = vmatprep.subr.bf16.mxu0 %v54_v21 }
  0x46   :  { %661 = vmatpush3.bf16.xpose.msra.mxu0 %v54_v21 }
  0x47   :  { %662 = vmatprep.subr.bf16.mxu0 %v55_v24 }
  0x4e   :  { %663 = vmatpush3.bf16.xpose.msra.mxu0 %v55_v24 }
  0x55   :  { %665 = vmatmul.mubr.bf16.vlgmr.msra.gmra.mrb[0].mxu0 %v748_v25  ;;  %v764_v25 = vld [vmem:[#allocation2 + $0x8] sm:$0xff]  }
  0x56   :  { %668 = vmatprep.mubr.bf16.mxu0 %v749_v26  ;;  %v765_v26 = vld [vmem:[#allocation2 + $0x10] sm:$0xff]  }
  0x5d   :  { %669 = vmatmul.mubr.bf16.gmra.mrb[4].mxu0 %v750_v27  ;;  %v766_v27 = vld [vmem:[#allocation2 + $0x18] sm:$0xff]  }
  0x5e   :  { %672 = vmatprep.mubr.bf16.mxu0 %v751_v28  ;;  %v767_v28 = vld [vmem:[#allocation2 + $0x20] sm:$0xff]  }
  0x65   :  { %673 = vmatmul.mubr.bf16.gmra.mrb[8].mxu0 %v752_v29  ;;  %v768_v29 = vld [vmem:[#allocation2 + $0x28] sm:$0xff]  }
  0x66   :  { %676 = vmatprep.mubr.bf16.mxu0 %v753_v30  ;;  %v769_v30 = vld [vmem:[#allocation2 + $0x30] sm:$0xff]  }
  0x6d   :  { %677 = vmatmul.mubr.bf16.gmra.mrb[12].mxu0 %v754_v31  ;;  %v770_v31 = vld [vmem:[#allocation2 + $0x38] sm:$0xff]  }
 0x128   :  { %v666_v33 = vpop.f32.mrb[0].mxu0 }
 0x129   :  { %v154_v34 = vpop.f32.mrb[1].mxu0 }
 0x12a   :  { %v667_v35 = vpop.f32.mrb[2].mxu0 }
 0x12b   :  { %v218_v36 = vpack.c.bf16 %v667_v35, %v666_v33  ;;  %v157_v37 = vpop.f32.mrb[3].mxu0 }
 0x12c   :  { %v217_v38 = vpack.c.bf16 %v157_v37, %v154_v34 }
 0x12e   :  { %680 = vmatprep.subr.bf16.mxu1 %v217_v38 }
 0x12f   :  { %681 = vmatpush3.bf16.msra.mxu1 %v217_v38 }
 0x130   :  { %v670_v39 = vpop.f32.mrb[4].mxu0  ;;  %682 = vmatprep.subr.bf16.mxu1 %v218_v36 }
 0x131   :  { %v170_v40 = vpop.f32.mrb[5].mxu0 }
 0x132   :  { %v671_v41 = vpop.f32.mrb[6].mxu0 }
 0x133   :  { %v220_v42 = vpack.c.bf16 %v671_v41, %v670_v39  ;;  %v173_v43 = vpop.f32.mrb[7].mxu0  ;;  %683 = vmatpush3.bf16.msra.mxu1 %v218_v36 }
 0x134   :  { %v219_v44 = vpack.c.bf16 %v173_v43, %v170_v40 }
 0x136   :  { %684 = vmatprep.subr.bf16.mxu1 %v219_v44 }
 0x137   :  { %685 = vmatpush3.bf16.msra.mxu1 %v219_v44 }
 0x138   :  { %v674_v45 = vpop.f32.mrb[8].mxu0  ;;  %686 = vmatprep.subr.bf16.mxu1 %v220_v42 }
 0x139   :  { %v186_v46 = vpop.f32.mrb[9].mxu0 }
 0x13a   :  { %v675_v47 = vpop.f32.mrb[10].mxu0 }
 0x13b   :  { %v222_v48 = vpack.c.bf16 %v675_v47, %v674_v45  ;;  %v189_v49 = vpop.f32.mrb[11].mxu0  ;;  %687 = vmatpush3.bf16.msra.mxu1 %v220_v42 }
 0x13c   :  { %v221_v50 = vpack.c.bf16 %v189_v49, %v186_v46 }
 0x13e   :  { %688 = vmatprep.subr.bf16.mxu1 %v221_v50 }
 0x13f   :  { %689 = vmatpush3.bf16.msra.mxu1 %v221_v50 }
 0x140   :  { %v678_v51 = vpop.f32.mrb[12].mxu0  ;;  %690 = vmatprep.subr.bf16.mxu1 %v222_v48 }
 0x141   :  { %v202_v52 = vpop.f32.mrb[13].mxu0 }
 0x142   :  { %v679_v53 = vpop.f32.mrb[14].mxu0 }
 0x143   :  { %v224_v54 = vpack.c.bf16 %v679_v53, %v678_v51  ;;  %v205_v55 = vpop.f32.mrb[15].mxu0  ;;  %691 = vmatpush3.bf16.msra.mxu1 %v222_v48 }
 0x144   :  { %v223_v56 = vpack.c.bf16 %v205_v55, %v202_v52 }
 0x146   :  { %692 = vmatprep.subr.bf16.mxu1 %v223_v56 }
 0x147   :  { %693 = vmatpush3.bf16.msra.mxu1 %v223_v56 }
 0x148   :  { %694 = vmatprep.subr.bf16.mxu1 %v224_v54 }
 0x14b   :  { %695 = vmatpush3.bf16.msra.mxu1 %v224_v54 }
 0x14e   :  { %697 = vmatmul.mubr.bf16.vlgmr.msra.gmra.mrb[0].mxu1 %v756_v57 }
 0x14f   :  { %700 = vmatprep.mubr.bf16.mxu1 %v757_v58 }
 0x156   :  { %701 = vmatmul.mubr.bf16.gmra.mrb[4].mxu1 %v758_v59 }
 0x157   :  { %704 = vmatprep.mubr.bf16.mxu1 %v759_v60 }
 0x15e   :  { %705 = vmatmul.mubr.bf16.gmra.mrb[8].mxu1 %v760_v61 }
 0x15f   :  { %708 = vmatprep.mubr.bf16.mxu1 %v761_v62 }
 0x166   :  { %709 = vmatmul.mubr.bf16.gmra.mrb[12].mxu1 %v762_v63 }
 0x167   :  { %728 = vmatprep.mubr.bf16.mxu1 %v763_v0 }
 0x221   :  { %v698_v1 = vpop.f32.mrb[0].mxu1 }
 0x222   :  { %v323_v2 = vpop.f32.mrb[1].mxu1 }
 0x223   :  { %v699_v3 = vpop.f32.mrb[2].mxu1 }
 0x224   :  { %v387_v4 = vpack.c.bf16 %v699_v3, %v698_v1  ;;  %v326_v5 = vpop.f32.mrb[3].mxu1 }
 0x225   :  { %v386_v6 = vpack.c.bf16 %v326_v5, %v323_v2 }
 0x227   :  { %712 = vmatprep.subr.bf16.mxu1 %v386_v6 }
 0x228   :  { %713 = vmatpush3.bf16.msra.mxu1 %v386_v6 }
 0x229   :  { %v702_v7 = vpop.f32.mrb[4].mxu1  ;;  %714 = vmatprep.subr.bf16.mxu1 %v387_v4 }
 0x22a   :  { %v339_v8 = vpop.f32.mrb[5].mxu1 }
 0x22b   :  { %v703_v9 = vpop.f32.mrb[6].mxu1 }
 0x22c   :  { %v389_v10 = vpack.c.bf16 %v703_v9, %v702_v7  ;;  %v342_v11 = vpop.f32.mrb[7].mxu1  ;;  %715 = vmatpush3.bf16.msra.mxu1 %v387_v4 }
 0x22d   :  { %v388_v12 = vpack.c.bf16 %v342_v11, %v339_v8 }
 0x22f   :  { %716 = vmatprep.subr.bf16.mxu1 %v388_v12 }
 0x230   :  { %717 = vmatpush3.bf16.msra.mxu1 %v388_v12 }
 0x231   :  { %v706_v13 = vpop.f32.mrb[8].mxu1  ;;  %718 = vmatprep.subr.bf16.mxu1 %v389_v10 }
 0x232   :  { %v355_v14 = vpop.f32.mrb[9].mxu1 }
 0x233   :  { %v707_v15 = vpop.f32.mrb[10].mxu1 }
 0x234   :  { %v391_v16 = vpack.c.bf16 %v707_v15, %v706_v13  ;;  %v358_v17 = vpop.f32.mrb[11].mxu1  ;;  %719 = vmatpush3.bf16.msra.mxu1 %v389_v10 }
 0x235   :  { %v390_v18 = vpack.c.bf16 %v358_v17, %v355_v14 }
 0x237   :  { %720 = vmatprep.subr.bf16.mxu1 %v390_v18 }
 0x238   :  { %721 = vmatpush3.bf16.msra.mxu1 %v390_v18 }
 0x239   :  { %v710_v19 = vpop.f32.mrb[12].mxu1  ;;  %722 = vmatprep.subr.bf16.mxu1 %v391_v16 }
 0x23a   :  { %v371_v20 = vpop.f32.mrb[13].mxu1 }
 0x23b   :  { %v711_v21 = vpop.f32.mrb[14].mxu1 }
 0x23c   :  { %v393_v22 = vpack.c.bf16 %v711_v21, %v710_v19  ;;  %v374_v23 = vpop.f32.mrb[15].mxu1  ;;  %723 = vmatpush3.bf16.msra.mxu1 %v391_v16 }
 0x23d   :  { %v392_v24 = vpack.c.bf16 %v374_v23, %v371_v20 }
 0x23f   :  { %724 = vmatprep.subr.bf16.mxu1 %v392_v24 }
 0x240   :  { %725 = vmatpush3.bf16.msra.mxu1 %v392_v24 }
 0x241   :  { %726 = vmatprep.subr.bf16.mxu1 %v393_v22 }
 0x244   :  { %727 = vmatpush3.bf16.msra.mxu1 %v393_v22 }
 0x247   :  { %729 = vmatmul.mubr.bf16.vlgmr.msra.gmra.mrb[16].mxu1 %v764_v25 }
 0x248   :  { %732 = vmatprep.mubr.bf16.mxu1 %v765_v26 }
 0x24f   :  { %733 = vmatmul.mubr.bf16.gmra.mrb[20].mxu1 %v766_v27 }
 0x250   :  { %736 = vmatprep.mubr.bf16.mxu1 %v767_v28 }
 0x257   :  { %737 = vmatmul.mubr.bf16.gmra.mrb[24].mxu1 %v768_v29 }
 0x258   :  { %740 = vmatprep.mubr.bf16.mxu1 %v769_v30 }
 0x25f   :  { %741 = vmatmul.mubr.bf16.gmra.mrb[28].mxu1 %v770_v31 }
 0x31a   :  { %v730_v32 = vpop.f32.mrb[16].mxu1 }
 0x31b   :  { %557 = vst [vmem:[%s983_s4 + $0x10] sm:$0xff] %v730_v32  ;;  %v492_v33 = vpop.f32.mrb[17].mxu1 }
 0x31c   :  { %555 = vst [vmem:[%s983_s4] sm:$0xff] %v492_v33  ;;  %v731_v34 = vpop.f32.mrb[18].mxu1 }
 0x31d   :  { %558 = vst [vmem:[%s983_s4 + $0x18] sm:$0xff] %v731_v34  ;;  %v495_v35 = vpop.f32.mrb[19].mxu1 }
 0x31e   :  { %556 = vst [vmem:[%s983_s4 + $0x8] sm:$0xff] %v495_v35 }
 0x322   :  { %v734_v36 = vpop.f32.mrb[20].mxu1 }
 0x323   :  { %561 = vst [vmem:[%s983_s4 + $0x30] sm:$0xff] %v734_v36  ;;  %v508_v37 = vpop.f32.mrb[21].mxu1 }
 0x324   :  { %559 = vst [vmem:[%s983_s4 + $0x20] sm:$0xff] %v508_v37  ;;  %v735_v38 = vpop.f32.mrb[22].mxu1 }
 0x325   :  { %562 = vst [vmem:[%s983_s4 + $0x38] sm:$0xff] %v735_v38  ;;  %v511_v39 = vpop.f32.mrb[23].mxu1 }
 0x326   :  { %560 = vst [vmem:[%s983_s4 + $0x28] sm:$0xff] %v511_v39 }
 0x32a   :  { %v738_v40 = vpop.f32.mrb[24].mxu1 }
 0x32b   :  { %565 = vst [vmem:[%s983_s4 + $0x50] sm:$0xff] %v738_v40  ;;  %v524_v41 = vpop.f32.mrb[25].mxu1 }
 0x32c   :  { %563 = vst [vmem:[%s983_s4 + $0x40] sm:$0xff] %v524_v41  ;;  %v739_v42 = vpop.f32.mrb[26].mxu1 }
 0x32d   :  { %566 = vst [vmem:[%s983_s4 + $0x58] sm:$0xff] %v739_v42  ;;  %v527_v43 = vpop.f32.mrb[27].mxu1 }
 0x32e   :  { %564 = vst [vmem:[%s983_s4 + $0x48] sm:$0xff] %v527_v43 }
 0x332   :  { %v742_v44 = vpop.f32.mrb[28].mxu1 }
 0x333   :  { %569 = vst [vmem:[%s983_s4 + $0x70] sm:$0xff] %v742_v44  ;;  %v540_v45 = vpop.f32.mrb[29].mxu1 }
 0x334   :  { %567 = vst [vmem:[%s983_s4 + $0x60] sm:$0xff] %v540_v45  ;;  %v743_v46 = vpop.f32.mrb[30].mxu1 }
 0x335   :  { %570 = vst [vmem:[%s983_s4 + $0x78] sm:$0xff] %v743_v46  ;;  %v543_v47 = vpop.f32.mrb[31].mxu1 }
 0x336   :  { %568 = vst [vmem:[%s983_s4 + $0x68] sm:$0xff] %v543_v47 }
 0x337   :  { %575 = vsyncpa [#allocation3], 1 }

</bundles_post_ra>
